<compile_context>
chip_gen: v5e
topology: v5e:2x2
jax: 0.10.0
libtpu: 0.0.40
codegen_flags: <defaults>
</compile_context>

<pallas_src>
import jax
import jax.numpy as jnp
from jax.experimental import pallas as pl
from jax.experimental.pallas import tpu as pltpu

SUBLANE = 8  # f32 sublane granularity


def _round_up(x, m):
    return ((x + m - 1) // m) * m


def triple_fc_kernel(
    xff_ref, xrec_ref, xtd_ref,        # activations (tile_b, in/out/td_ch) f32
    wrec_ref, brec_ref,                # recurrent   (out_ch, in_ch), (1, in_ch)
    wtd_ref, btd_ref,                  # topdown     (td_ch, in_ch),  (1, in_ch)
    wff_ref, bff_ref,                  # feedforward (in_ch, out_ch), (1, out_ch)
    out_ref, rec_out_ref, td_out_ref,  # outputs (tile_b, out/in/in_ch) f32
):
    mm_dt = wff_ref.dtype   # bf16 (default) or f32; accumulation is always f32

    # recurrent path: (T, out_ch) @ (out_ch, in_ch) -> (T, in_ch), relu
    x_rec = jnp.maximum(
        jnp.dot(xrec_ref[...].astype(mm_dt), wrec_ref[...],
                preferred_element_type=jnp.float32) + brec_ref[...],
        0.0)
    # top-down path: (T, td_ch) @ (td_ch, in_ch) -> (T, in_ch), tanh
    x_td = jnp.tanh(
        jnp.dot(xtd_ref[...].astype(mm_dt), wtd_ref[...],
                preferred_element_type=jnp.float32) + btd_ref[...])
    # combine (f32 elementwise) and feedforward: (T, in_ch) @ (in_ch, out_ch), relu
    x = xff_ref[...] + x_rec + x_td
    out = jnp.maximum(
        jnp.dot(x.astype(mm_dt), wff_ref[...],
                preferred_element_type=jnp.float32) + bff_ref[...],
        0.0)

    out_ref[...] = out
    rec_out_ref[...] = x_rec
    td_out_ref[...] = x_td


def prepare_params(params, matmul_dtype=jnp.bfloat16):
    """One-time param prep: transpose nn.Linear weights to (in, out) layout,
    cast them to the MXU dtype (bf16 default, f32 for exact parity) and keep
    biases as f32 (1, features) rows.  No feature-dim padding is needed."""
    w_ff, b_ff = params["feedforward"]     # (out_ch, in_ch), (out_ch,)
    w_rec, b_rec = params["recurrent"]     # (in_ch, out_ch), (in_ch,)
    w_td, b_td = params["topdown"]         # (in_ch, td_ch),  (in_ch,)

    out_ch, in_ch = w_ff.shape
    td_ch = w_td.shape[1]

    return {
        "in_ch": in_ch, "out_ch": out_ch, "td_ch": td_ch,
        "w_ff_t": jnp.asarray(w_ff.T, matmul_dtype),    # (in_ch, out_ch)
        "w_rec_t": jnp.asarray(w_rec.T, matmul_dtype),  # (out_ch, in_ch)
        "w_td_t": jnp.asarray(w_td.T, matmul_dtype),    # (td_ch, in_ch)
        "b_ff": jnp.asarray(b_ff, jnp.float32).reshape(1, out_ch),
        "b_rec": jnp.asarray(b_rec, jnp.float32).reshape(1, in_ch),
        "b_td": jnp.asarray(b_td, jnp.float32).reshape(1, in_ch),
    }


def triple_layer_fc(x_ff, x_rec_in, x_td_in, prepared, *,
                    max_tile_b=2048, vmem_budget_bytes=24 * 1024 * 1024):
    """Batch-tiled Pallas call. `prepared` comes from prepare_params()."""
    in_ch, out_ch, td_ch = prepared["in_ch"], prepared["out_ch"], prepared["td_ch"]

    # Flatten N-D inputs consistently (mirrors .contiguous().view(-1, C)).
    if x_ff.ndim > 2:
        x_ff = x_ff.reshape(-1, in_ch)
    if x_rec_in.ndim > 2:
        x_rec_in = x_rec_in.reshape(-1, out_ch)
    if x_td_in.ndim > 2:
        x_td_in = x_td_in.reshape(-1, td_ch)
    x_ff = x_ff.astype(jnp.float32)
    x_rec_in = x_rec_in.astype(jnp.float32)
    x_td_in = x_td_in.astype(jnp.float32)
    B = x_ff.shape[0]

    # ---- tile selection ----------------------------------------------------
    # VMEM-aware cap: activations/outputs are double-buffered per row; resident
    # weights/biases are also allocated twice by the default pipeliner.
    w_bytes = jnp.dtype(prepared["w_ff_t"].dtype).itemsize
    weight_vmem = 2 * (w_bytes * (2 * in_ch * out_ch + td_ch * in_ch)
                       + 4 * (out_ch + 2 * in_ch))
    row_vmem = 2 * 4 * ((in_ch + out_ch + td_ch) + (out_ch + 2 * in_ch))
    avail = max(0, vmem_budget_bytes - weight_vmem)
    cap = max(SUBLANE, (avail // row_vmem) // SUBLANE * SUBLANE)
    max_tile_b = max(SUBLANE, min(max_tile_b, cap))

    n_tiles = pl.cdiv(B, max_tile_b)
    if n_tiles == 1 and B > SUBLANE:
        n_tiles = 2                     # give v7x's two TensorCores both a tile
    tile_b = _round_up(pl.cdiv(B, n_tiles), SUBLANE)
    n_tiles = pl.cdiv(B, tile_b)
    B_p = n_tiles * tile_b

    # Minimal batch-only pad (feature dims are never padded); skipped entirely
    # when B is already tile-aligned (common case -> zero wrapper copies).
    if B_p != B:
        pad = ((0, B_p - B), (0, 0))
        x_ff = jnp.pad(x_ff, pad)
        x_rec_in = jnp.pad(x_rec_in, pad)
        x_td_in = jnp.pad(x_td_in, pad)

    def act_spec(feat):
        return pl.BlockSpec((tile_b, feat), lambda i: (i, 0))

    def const_spec(arr):
        return pl.BlockSpec(arr.shape, lambda i: (0, 0))    # VMEM-resident

    out_shapes = (
        jax.ShapeDtypeStruct((B_p, out_ch), jnp.float32),   # output
        jax.ShapeDtypeStruct((B_p, in_ch), jnp.float32),    # x_recurrent
        jax.ShapeDtypeStruct((B_p, in_ch), jnp.float32),    # x_topdown
    )

    flops = 2 * B_p * (out_ch * in_ch + td_ch * in_ch + in_ch * out_ch)
    bytes_accessed = (
        4 * B_p * (in_ch + out_ch + td_ch)                   # activation reads
        + w_bytes * (2 * in_ch * out_ch + td_ch * in_ch)     # weights
        + 4 * (out_ch + 2 * in_ch)                           # biases
        + 4 * B_p * (out_ch + 2 * in_ch)                     # outputs
    )
    cost = pl.CostEstimate(flops=flops, transcendentals=B_p * in_ch,
                           bytes_accessed=bytes_accessed)

    out, rec, td = pl.pallas_call(
        triple_fc_kernel,
        out_shape=out_shapes,
        grid=(n_tiles,),
        in_specs=[
            act_spec(in_ch), act_spec(out_ch), act_spec(td_ch),
            const_spec(prepared["w_rec_t"]), const_spec(prepared["b_rec"]),
            const_spec(prepared["w_td_t"]), const_spec(prepared["b_td"]),
            const_spec(prepared["w_ff_t"]), const_spec(prepared["b_ff"]),
        ],
        out_specs=(act_spec(out_ch), act_spec(in_ch), act_spec(in_ch)),
        compiler_params=pltpu.CompilerParams(
            dimension_semantics=("parallel",),     # shards batch tiles on v7x
            vmem_limit_bytes=32 * 1024 * 1024,
        ),
        cost_estimate=cost,
    )(
        x_ff, x_rec_in, x_td_in,
        prepared["w_rec_t"], prepared["b_rec"],
        prepared["w_td_t"], prepared["b_td"],
        prepared["w_ff_t"], prepared["b_ff"],
    )

    if B_p != B:    # de-pad only when a batch pad actually happened
        out, rec, td = out[:B], rec[:B], td[:B]
    return out, rec, td


def init_params(key, input_channels, output_channels, topdown_channels):
    """Deterministic nn.Linear-style init: U(-1/sqrt(fan_in), 1/sqrt(fan_in))."""
    def linear(k, fan_out, fan_in):
        kw, kb = jax.random.split(k)
        bound = 1.0 / jnp.sqrt(fan_in)
        w = jax.random.uniform(kw, (fan_out, fan_in), jnp.float32, -bound, bound)
        b = jax.random.uniform(kb, (fan_out,), jnp.float32, -bound, bound)
        return w, b

    k_ff, k_rec, k_td = jax.random.split(key, 3)
    return {
        "feedforward": linear(k_ff, output_channels, input_channels),
        "recurrent": linear(k_rec, input_channels, output_channels),
        "topdown": linear(k_td, input_channels, topdown_channels),
    }


if __name__ == "__main__":
    input_channels = 32
    output_channels = 64
    topdown_channels = 16
    batch = 8

    key = jax.random.PRNGKey(0)
    k_params, k_ff, k_rec, k_td = jax.random.split(key, 4)

    params = init_params(k_params, input_channels, output_channels, topdown_channels)

    x_ff = jax.random.normal(k_ff, (batch, input_channels), jnp.float32)
    x_rec_in = jax.random.normal(k_rec, (batch, output_channels), jnp.float32)
    x_td_in = jax.random.normal(k_td, (batch, topdown_channels), jnp.float32)

    # pure-JAX reference
    w_ff, b_ff = params["feedforward"]
    w_rec, b_rec = params["recurrent"]
    w_td, b_td = params["topdown"]
    ref_rec = jnp.maximum(x_rec_in @ w_rec.T + b_rec, 0.0)
    ref_td = jnp.tanh(x_td_in @ w_td.T + b_td)
    ref_out = jnp.maximum((x_ff + ref_rec + ref_td) @ w_ff.T + b_ff, 0.0)

    # default bf16 MXU path (f32 accumulation / elementwise)
    prepared = prepare_params(params)
    out, x_recurrent, x_topdown = triple_layer_fc(x_ff, x_rec_in, x_td_in, prepared)
    jax.block_until_ready((out, x_recurrent, x_topdown))

    assert out.shape == (batch, output_channels)
    assert x_recurrent.shape == (batch, input_channels)
    assert x_topdown.shape == (batch, input_channels)
    assert jnp.allclose(out, ref_out, atol=2e-2, rtol=2e-2)
    assert jnp.allclose(x_recurrent, ref_rec, atol=2e-2, rtol=2e-2)
    assert jnp.allclose(x_topdown, ref_td, atol=2e-2, rtol=2e-2)

    # exact-parity f32 path
    prepared_f32 = prepare_params(params, matmul_dtype=jnp.float32)
    out32, rec32, td32 = triple_layer_fc(x_ff, x_rec_in, x_td_in, prepared_f32)
    jax.block_until_ready((out32, rec32, td32))
    assert jnp.allclose(out32, ref_out, atol=1e-5)
    assert jnp.allclose(rec32, ref_rec, atol=1e-5)
    assert jnp.allclose(td32, ref_td, atol=1e-5)

    print("KERNEL_OK")
</pallas_src>

<mosaic_0001>
module attributes {stable_mosaic.version = 11 : i64} {
  func.func @triple_fc_kernel(%arg0: i32, %arg1: memref<8x32xf32, #tpu.memory_space<vmem>>, %arg2: memref<8x64xf32, #tpu.memory_space<vmem>>, %arg3: memref<8x16xf32, #tpu.memory_space<vmem>>, %arg4: memref<64x32xbf16, #tpu.memory_space<vmem>>, %arg5: memref<1x32xf32, #tpu.memory_space<vmem>>, %arg6: memref<16x32xbf16, #tpu.memory_space<vmem>>, %arg7: memref<1x32xf32, #tpu.memory_space<vmem>>, %arg8: memref<32x64xbf16, #tpu.memory_space<vmem>>, %arg9: memref<1x64xf32, #tpu.memory_space<vmem>>, %arg10: memref<8x64xf32, #tpu.memory_space<vmem>>, %arg11: memref<8x32xf32, #tpu.memory_space<vmem>>, %arg12: memref<8x32xf32, #tpu.memory_space<vmem>>) attributes {dimension_semantics = [#tpu.dimension_semantics<parallel>], iteration_bounds = array<i64: 1>, scalar_prefetch = 0 : i64, scratch_operands = 0 : i64, tpu.core_type = #tpu.core_type<tc>, window_params = [{transform_indices = @transform_0, window_bounds = array<i64: 8, 32>}, {transform_indices = @transform_1, window_bounds = array<i64: 8, 64>}, {transform_indices = @transform_2, window_bounds = array<i64: 8, 16>}, {pipeline_mode = #tpu.pipeline_mode<synchronous>, transform_indices = @transform_3, window_bounds = array<i64: 64, 32>}, {pipeline_mode = #tpu.pipeline_mode<synchronous>, transform_indices = @transform_4, window_bounds = array<i64: 1, 32>}, {pipeline_mode = #tpu.pipeline_mode<synchronous>, transform_indices = @transform_5, window_bounds = array<i64: 16, 32>}, {pipeline_mode = #tpu.pipeline_mode<synchronous>, transform_indices = @transform_6, window_bounds = array<i64: 1, 32>}, {pipeline_mode = #tpu.pipeline_mode<synchronous>, transform_indices = @transform_7, window_bounds = array<i64: 32, 64>}, {pipeline_mode = #tpu.pipeline_mode<synchronous>, transform_indices = @transform_8, window_bounds = array<i64: 1, 64>}, {transform_indices = @transform_9, window_bounds = array<i64: 8, 64>}, {transform_indices = @transform_10, window_bounds = array<i64: 8, 32>}, {transform_indices = @transform_11, window_bounds = array<i64: 8, 32>}]} {
    %c0 = arith.constant 0 : index
    %c0_0 = arith.constant 0 : index
    %0 = vector.load %arg2[%c0, %c0_0] : memref<8x64xf32, #tpu.memory_space<vmem>>, vector<8x64xf32>
    %1 = arith.truncf %0 : vector<8x64xf32> to vector<8x64xbf16>
    %c0_1 = arith.constant 0 : index
    %c0_2 = arith.constant 0 : index
    %2 = vector.load %arg4[%c0_1, %c0_2] : memref<64x32xbf16, #tpu.memory_space<vmem>>, vector<64x32xbf16>
    %cst = arith.constant dense<0.000000e+00> : vector<8x32xf32>
    %3 = tpu.matmul %1, %2, %cst {dimension_numbers = #tpu.dot_dimension_numbers<[1], [0], [0], [1], [0, 0, 1, 1], [], []>} : vector<8x64xbf16>, vector<64x32xbf16>, vector<8x32xf32> -> vector<8x32xf32>
    %c0_3 = arith.constant 0 : index
    %c0_4 = arith.constant 0 : index
    %4 = vector.load %arg5[%c0_3, %c0_4] : memref<1x32xf32, #tpu.memory_space<vmem>>, vector<1x32xf32>
    %5 = vector.broadcast %4 : vector<1x32xf32> to vector<8x32xf32>
    %6 = arith.addf %3, %5 : vector<8x32xf32>
    %cst_5 = arith.constant 0.000000e+00 : f32
    %7 = vector.broadcast %cst_5 : f32 to vector<8x32xf32>
    %8 = arith.maximumf %6, %7 : vector<8x32xf32>
    %c0_6 = arith.constant 0 : index
    %c0_7 = arith.constant 0 : index
    %9 = vector.load %arg3[%c0_6, %c0_7] : memref<8x16xf32, #tpu.memory_space<vmem>>, vector<8x16xf32>
    %10 = arith.truncf %9 : vector<8x16xf32> to vector<8x16xbf16>
    %c0_8 = arith.constant 0 : index
    %c0_9 = arith.constant 0 : index
    %11 = vector.load %arg6[%c0_8, %c0_9] : memref<16x32xbf16, #tpu.memory_space<vmem>>, vector<16x32xbf16>
    %cst_10 = arith.constant dense<0.000000e+00> : vector<8x32xf32>
    %12 = tpu.matmul %10, %11, %cst_10 {dimension_numbers = #tpu.dot_dimension_numbers<[1], [0], [0], [1], [0, 0, 1, 1], [], []>} : vector<8x16xbf16>, vector<16x32xbf16>, vector<8x32xf32> -> vector<8x32xf32>
    %c0_11 = arith.constant 0 : index
    %c0_12 = arith.constant 0 : index
    %13 = vector.load %arg7[%c0_11, %c0_12] : memref<1x32xf32, #tpu.memory_space<vmem>>, vector<1x32xf32>
    %14 = vector.broadcast %13 : vector<1x32xf32> to vector<8x32xf32>
    %15 = arith.addf %12, %14 : vector<8x32xf32>
    %16 = math.tanh %15 : vector<8x32xf32>
    %c0_13 = arith.constant 0 : index
    %c0_14 = arith.constant 0 : index
    %17 = vector.load %arg1[%c0_13, %c0_14] : memref<8x32xf32, #tpu.memory_space<vmem>>, vector<8x32xf32>
    %18 = arith.addf %17, %8 : vector<8x32xf32>
    %19 = arith.addf %18, %16 : vector<8x32xf32>
    %20 = arith.truncf %19 : vector<8x32xf32> to vector<8x32xbf16>
    %c0_15 = arith.constant 0 : index
    %c0_16 = arith.constant 0 : index
    %21 = vector.load %arg8[%c0_15, %c0_16] : memref<32x64xbf16, #tpu.memory_space<vmem>>, vector<32x64xbf16>
    %cst_17 = arith.constant dense<0.000000e+00> : vector<8x64xf32>
    %22 = tpu.matmul %20, %21, %cst_17 {dimension_numbers = #tpu.dot_dimension_numbers<[1], [0], [0], [1], [0, 0, 1, 1], [], []>} : vector<8x32xbf16>, vector<32x64xbf16>, vector<8x64xf32> -> vector<8x64xf32>
    %c0_18 = arith.constant 0 : index
    %c0_19 = arith.constant 0 : index
    %23 = vector.load %arg9[%c0_18, %c0_19] : memref<1x64xf32, #tpu.memory_space<vmem>>, vector<1x64xf32>
    %24 = vector.broadcast %23 : vector<1x64xf32> to vector<8x64xf32>
    %25 = arith.addf %22, %24 : vector<8x64xf32>
    %cst_20 = arith.constant 0.000000e+00 : f32
    %26 = vector.broadcast %cst_20 : f32 to vector<8x64xf32>
    %27 = arith.maximumf %25, %26 : vector<8x64xf32>
    %c0_21 = arith.constant 0 : index
    %c0_22 = arith.constant 0 : index
    %28 = vector.load %arg10[%c0_21, %c0_22] : memref<8x64xf32, #tpu.memory_space<vmem>>, vector<8x64xf32>
    tpu.vector_store %arg10[%c0_21, %c0_22], %27 {strides = array<i32>} : memref<8x64xf32, #tpu.memory_space<vmem>>, vector<8x64xf32>,
    %c0_23 = arith.constant 0 : index
    %c0_24 = arith.constant 0 : index
    %29 = vector.load %arg11[%c0_23, %c0_24] : memref<8x32xf32, #tpu.memory_space<vmem>>, vector<8x32xf32>
    tpu.vector_store %arg11[%c0_23, %c0_24], %8 {strides = array<i32>} : memref<8x32xf32, #tpu.memory_space<vmem>>, vector<8x32xf32>,
    %c0_25 = arith.constant 0 : index
    %c0_26 = arith.constant 0 : index
    %30 = vector.load %arg12[%c0_25, %c0_26] : memref<8x32xf32, #tpu.memory_space<vmem>>, vector<8x32xf32>
    tpu.vector_store %arg12[%c0_25, %c0_26], %16 {strides = array<i32>} : memref<8x32xf32, #tpu.memory_space<vmem>>, vector<8x32xf32>,
    return
  }
  func.func @transform_0(%arg0: i32) -> (i32, i32) {
    %c0_i32 = arith.constant 0 : i32
    %c0_i32_0 = arith.constant 0 : i32
    return %arg0, %c0_i32 : i32, i32
  }
  func.func @transform_1(%arg0: i32) -> (i32, i32) {
    %c0_i32 = arith.constant 0 : i32
    %c0_i32_0 = arith.constant 0 : i32
    return %arg0, %c0_i32 : i32, i32
  }
  func.func @transform_2(%arg0: i32) -> (i32, i32) {
    %c0_i32 = arith.constant 0 : i32
    %c0_i32_0 = arith.constant 0 : i32
    return %arg0, %c0_i32 : i32, i32
  }
  func.func @transform_3(%arg0: i32) -> (i32, i32) {
    %c0_i32 = arith.constant 0 : i32
    %c0_i32_0 = arith.constant 0 : i32
    %c0_i32_1 = arith.constant 0 : i32
    return %c0_i32, %c0_i32_0 : i32, i32
  }
  func.func @transform_4(%arg0: i32) -> (i32, i32) {
    %c0_i32 = arith.constant 0 : i32
    %c0_i32_0 = arith.constant 0 : i32
    %c0_i32_1 = arith.constant 0 : i32
    return %c0_i32, %c0_i32_0 : i32, i32
  }
  func.func @transform_5(%arg0: i32) -> (i32, i32) {
    %c0_i32 = arith.constant 0 : i32
    %c0_i32_0 = arith.constant 0 : i32
    %c0_i32_1 = arith.constant 0 : i32
    return %c0_i32, %c0_i32_0 : i32, i32
  }
  func.func @transform_6(%arg0: i32) -> (i32, i32) {
    %c0_i32 = arith.constant 0 : i32
    %c0_i32_0 = arith.constant 0 : i32
    %c0_i32_1 = arith.constant 0 : i32
    return %c0_i32, %c0_i32_0 : i32, i32
  }
  func.func @transform_7(%arg0: i32) -> (i32, i32) {
    %c0_i32 = arith.constant 0 : i32
    %c0_i32_0 = arith.constant 0 : i32
    %c0_i32_1 = arith.constant 0 : i32
    return %c0_i32, %c0_i32_0 : i32, i32
  }
  func.func @transform_8(%arg0: i32) -> (i32, i32) {
    %c0_i32 = arith.constant 0 : i32
    %c0_i32_0 = arith.constant 0 : i32
    %c0_i32_1 = arith.constant 0 : i32
    return %c0_i32, %c0_i32_0 : i32, i32
  }
  func.func @transform_9(%arg0: i32) -> (i32, i32) {
    %c0_i32 = arith.constant 0 : i32
    %c0_i32_0 = arith.constant 0 : i32
    return %arg0, %c0_i32 : i32, i32
  }
  func.func @transform_10(%arg0: i32) -> (i32, i32) {
    %c0_i32 = arith.constant 0 : i32
    %c0_i32_0 = arith.constant 0 : i32
    return %arg0, %c0_i32 : i32, i32
  }
  func.func @transform_11(%arg0: i32) -> (i32, i32) {
    %c0_i32 = arith.constant 0 : i32
    %c0_i32_0 = arith.constant 0 : i32
    return %arg0, %c0_i32 : i32, i32
  }
}

</mosaic_0001>

<bundles_post_ra>
// kernel: tpu_custom_call.1
= control target key start
LH: loop header
LB: loop body
LE: loop exit
PB: predicated region body
PF: predicated region fallthrough
CT: control target
= control target key end

     0   :  { %17 = vsyncpa [#allocation3], 0  ;;  %vm108_vm0 = vcmask 130048   ;;  %s453_s0 = inlined_call_operand.vmem [shape: f32[8,32], index: 0, kind: input, shape index: {}]   ;;  %s454_s1 = inlined_call_operand.vmem [shape: f32[8,64], index: 1, kind: input, shape index: {}]   ;;  %s455_s2 = inlined_call_operand.vmem [shape: f32[8,16], index: 2, kind: input, shape index: {}]   ;;  %s456_s3 = inlined_call_operand.vmem [shape: bf16[64,32], index: 3, kind: input, shape index: {}]   ;;  %s457_s4 = inlined_call_operand.vmem [shape: f32[1,32], index: 4, kind: input, shape index: {}]   ;;  %s458_s5 = inlined_call_operand.vmem [shape: bf16[16,32], index: 5, kind: input, shape index: {}]   ;;  %s459_s6 = inlined_call_operand.vmem [shape: f32[1,32], index: 6, kind: input, shape index: {}]   ;;  %s460_s7 = inlined_call_operand.vmem [shape: bf16[32,64], index: 7, kind: input, shape index: {}]   ;;  %s461_s8 = inlined_call_operand.vmem [shape: f32[1,64], index: 8, kind: input, shape index: {}]   ;;  %s462_s9 = inlined_call_operand.hbm [shape: f32[8,64], index: 9, kind: output, shape index: {0}]   ;;  %s463_s10 = inlined_call_operand.hbm [shape: f32[8,32], index: 10, kind: output, shape index: {1}]   ;;  %s464_s11 = inlined_call_operand.hbm [shape: f32[8,32], index: 11, kind: output, shape index: {2}]  }
   0x1   :  { %v252_v0 = vld [vmem:[%s456_s3 + $0x18] sm:$0xff]  ;;  %v253_v1 = vld [vmem:[%s458_s5] sm:$0xff]  ;;  %v251_v3 = vld [vmem:[%s456_s3 + $0x10] sm:$0xff] }
   0x2   :  { %v94_v2 = vld [vmem:[%s455_s2] sm:$0xff]  ;;  %84 = vmatpush.bf16.msra.mxu0 %v252_v0  ;;  %119 = vmatpush.bf16.msra.mxu1 %v253_v1 }
   0x3   :  { %v95_v4 = vpack.c.bf16 %v94_v2, %v94_v2 }
   0x4   :  { %18 = vsyncpa [#allocation5], 0  ;;  %v250_v5 = vld [vmem:[%s456_s3 + $0x8] sm:$0xff]  ;;  %v249_v6 = vld [vmem:[%s456_s3] sm:$0xff]  ;;  %vm76_vm1 = vcmask 523264   ;;  %vm150_vm2 = vcmask 261120  }
   0x5   :  { %239 = vmatmul.msk.bf16.vlgmr.msra.gmra.mxu1 %vm108_vm0, %v95_v4  ;;  %v38_v7 = vld [vmem:[%s454_s1] sm:$0xff]  ;;  %v255_v9 = vld [vmem:[%s460_s7 + $0x8] sm:$0xff]  ;;  %s341_s20 = smov [#allocation6]   ;;  %s200_s23 = sshll.u32 %s464_s11, 4  ;;  %s201_s23 = int_to_ptr.hbm [resolvable:$true] %s200_s23 }
   0x6   :  { %85 = vmatpush.bf16.msra.mxu0 %v251_v3  ;;  %v39_v8 = vpack.c.bf16 %v38_v7, %v38_v7  ;;  %160 = vmatpush.bf16.msra.mxu2 %v255_v9  ;;  %v254_v10 = vld [vmem:[%s460_s7] sm:$0xff]  ;;  %s198_s21 = sshll.u32 %s341_s20, 4  ;;  %s342_s26 = smov [#allocation2]   ;;  %s199_s21 = int_to_ptr.vmem [resolvable:$true] %s198_s21 }
   0x7   :  { %v259_v11 = vld [vmem:[%s459_s6] ss:$0 sm:$0xff]  ;;  %s340_s6 = smov [#allocation4]   ;;  %s176_s5 = sshll.u32 %s342_s26, 4  ;;  %s177_s5 = int_to_ptr.vmem [resolvable:$true] %s176_s5 }
   0x8   :  { %v260_v16 = vld [vmem:[%s457_s4] ss:$0 sm:$0xff]  ;;  %s187_s17 = sshll.u32 %s340_s6, 4  ;;  %s189_s4 = sshll.u32 %s463_s10, 4  ;;  %s188_s17 = int_to_ptr.vmem [resolvable:$true] %s187_s17  ;;  %s190_s4 = int_to_ptr.hbm [resolvable:$true] %s189_s4 }
   0x9   :  { %v126_v19 = vld [vmem:[%s453_s0] sm:$0xff]  ;;  %s178_s2 = sshll.u32 %s462_s9, 4  ;;  %s179_s2 = int_to_ptr.hbm [resolvable:$true] %s178_s2 }
   0xa   :  { %86 = vmatpush.bf16.msra.mxu0 %v250_v5  ;;  %161 = vmatpush.bf16.msra.mxu2 %v254_v10  ;;  %v261_v25 = vld [vmem:[%s461_s8] ss:$0 sm:$0xff] }
   0xe   :  { %87 = vmatpush.bf16.msra.mxu0 %v249_v6 }
  0x11   :  { %234 = vmatmul.msk.bf16.vlgmr.msra.gmra.mxu0 %vm76_vm1, %v39_v8 }
  0x82   :  { %v121_v12 = vpop.f32.mrf.mxu1 }
  0x83   :  { %v122_v13 = vadd.f32 %v259_v11, %v121_v12 }
  0x85   :  { %262 = vtanh.f32 %v122_v13 }
  0x8a   :  { %v123_v14 = vpop.f32.mrf.mxu1 }
  0x8b   :  { %v263_v15 = vpop.eup %262 }
  0x8c   :  { %170 = vst.msk [vmem:[#allocation6] sm:$0xff] %vm150_vm2, %v263_v15 }
  0x8e   :  { %v89_v17 = vpop.f32.mrf.mxu0 }
  0x8f   :  { %v90_v18 = vadd.f32 %v260_v16, %v89_v17 }
  0x91   :  { %v93_v20 = vmax.f32 %v90_v18, 0.0 }
  0x93   :  { %v127_v21 = vadd.f32 %v126_v19, %v93_v20  ;;  %169 = vst.msk [vmem:[#allocation4] sm:$0xff] %vm150_vm2, %v93_v20 }
  0x94   :  { %192 = dma.vmem_to_hbm [thread:$0]  %s188_s17, 128, %s190_s4, [#allocation5]  }
  0x95   :  { %v128_v22 = vadd.f32 %v263_v15, %v127_v21  ;;  %203 = dma.vmem_to_hbm [thread:$0]  %s199_s21, 128, %s201_s23, [#allocation5]  }
  0x96   :  { %v91_v23 = vpop.f32.mrf.mxu0 }
  0x97   :  { %v129_v24 = vpack.c.bf16 %v128_v22, %v128_v22 }
  0x99   :  { %248 = vmatmul.msk.bf16.vlgmr.msra.gmra.mxu2 %vm150_vm2, %v129_v24 }
 0x11c   :  { %v163_v26 = vpop.f32.mrf.mxu2 }
 0x11d   :  { %v164_v27 = vadd.f32 %v261_v25, %v163_v26 }
 0x11f   :  { %v167_v28 = vmax.f32 %v164_v27, 0.0 }
 0x121   :  { %168 = vst.msk [vmem:[#allocation2] sm:$0xff] %vm76_vm1, %v167_v28 }
 0x122   :  { %181 = dma.vmem_to_hbm [thread:$0]  %s177_s5, 128, %s179_s2, [#allocation3]  }
 0x124   :  { %v165_v29 = vpop.f32.mrf.mxu2 }
 0x125   :  { %336 = dma.done.wait [#allocation3], 128  }
 0x126   :  { %337 = vsyncadd [#allocation3], 4294967168 }
 0x127   :  { %338 = dma.done.wait [#allocation5], 256  }
 0x128   :  { %339 = vsyncadd [#allocation5], 4294967040 }
 0x129   :  { %216 = vsyncpa [#allocation3], 1 }
 0x12a   :  { %217 = vsyncpa [#allocation5], 1 }

</bundles_post_ra>
